<compile_context>
chip_gen: v6e
topology: v6e:2x2x1
jax: 0.10.0
libtpu: 0.0.40
codegen_flags: <defaults>
</compile_context>

<pallas_src>
import functools

import jax
import jax.numpy as jnp
from jax import lax
from jax.experimental import pallas as pl
from jax.experimental.pallas import tpu as pltpu

NEG_SLOPE = 0.01   # nn.LeakyReLU default
BN_EPS = 1e-5      # nn.BatchNorm1d default


def _round_up(x, m):
    return -(-x // m) * m


# ----------------------------------------------------------------------------
# FC layers: Linear (BN scale folded into W) + shift + LeakyReLU
# ----------------------------------------------------------------------------
def _fc_bn_lrelu_kernel(x_ref, w_ref, shift_ref, o_ref):
    # x: (B, K) bf16, w: (K, TN) bf16 (BN scale pre-folded), shift: (1, TN) f32
    y = jnp.dot(x_ref[...], w_ref[...], preferred_element_type=jnp.float32)
    y = y + shift_ref[...]                           # folded BatchNorm1d (eval)
    y = jnp.where(y > 0, y, NEG_SLOPE * y)           # LeakyReLU
    o_ref[...] = y.astype(o_ref.dtype)


def _pick_tile_n(n, k):
    """Weight-streaming tile: prefer >= 2 grid steps (megacore on v7x) while the
    single bf16 weight buffer stays <= 4 MiB (so the double-buffered window is
    <= 8 MiB -- safe under v5e's 16 MiB scoped-VMEM default)."""
    budget = 4 * 1024 * 1024
    for t in (2048, 1024, 512, 256, 128):
        if n % t == 0 and n // t >= 2 and k * t * 2 <= budget:
            return t
    return n


def fc_bn_lrelu(x_bf16, w_bf16, shift):
    """Linear(bias=False) + folded BatchNorm1d (eval) + LeakyReLU, tiled over N."""
    B, K = x_bf16.shape
    N = w_bf16.shape[1]
    tn = _pick_tile_n(N, K)
    return pl.pallas_call(
        _fc_bn_lrelu_kernel,
        out_shape=jax.ShapeDtypeStruct((B, N), jnp.bfloat16),
        grid_spec=pltpu.PrefetchScalarGridSpec(
            num_scalar_prefetch=0,
            grid=(N // tn,),
            in_specs=[
                pl.BlockSpec((B, K), lambda j: (0, 0)),       # resident activations
                pl.BlockSpec((K, tn), lambda j: (0, j)),      # streamed weight tiles
                pl.BlockSpec((1, tn), lambda j: (0, j)),      # folded BN shift
            ],
            out_specs=pl.BlockSpec((B, tn), lambda j: (0, j)),
        ),
        compiler_params=pltpu.CompilerParams(
            dimension_semantics=("parallel",)),
    )(x_bf16, w_bf16, shift.reshape(1, N))


# ----------------------------------------------------------------------------
# ConvTranspose2d(k3, s2, p1, op1, bias=False) as a 4-phase matmul with
# in-kernel tap construction (pltpu.roll + boundary masks).
# ----------------------------------------------------------------------------
def _phase_conv_kernel(x_ref, w_ref, o_ref, *, H, W, activation, roll_np):
    # x_ref: (Ci, HWp) bf16 — one image, spatial flattened row-major, lane-padded
    # w_ref: (4, 4*Co, Ci) bf16 — packed 4-phase weights, index 0..3 = tap
    #        [x(m,n), x(m,n+1), x(m+1,n), x(m+1,n+1)]
    # o_ref: (4*Co, HWp) — rows ordered (phase_y, phase_x, co)
    x = x_ref[...]
    S = x.shape[-1]                      # padded H*W (multiple of 128)

    lane = lax.broadcasted_iota(jnp.int32, (1, S), 1)
    in_x = (lane % W) < (W - 1)          # x[m, n+1] exists
    in_y = lane < (H - 1) * W            # x[m+1, n] exists

    def shifted(k):
        # y[l] = x[l + k] on the (circular, padded) lane axis.
        sh = (S - k) % S if roll_np else k
        return pltpu.roll(x, sh, axis=1)

    zero = jnp.zeros_like(x)
    t1 = jnp.where(in_x, shifted(1), zero)                        # x[m, n+1]
    t2 = jnp.where(in_y, shifted(W), zero)                        # x[m+1, n]
    t3 = jnp.where(jnp.logical_and(in_x, in_y), shifted(W + 1), zero)

    y = jnp.dot(w_ref[0], x, preferred_element_type=jnp.float32)
    y = y + jnp.dot(w_ref[1], t1, preferred_element_type=jnp.float32)
    y = y + jnp.dot(w_ref[2], t2, preferred_element_type=jnp.float32)
    y = y + jnp.dot(w_ref[3], t3, preferred_element_type=jnp.float32)

    if activation == "leaky_relu":
        y = jnp.where(y > 0, y, NEG_SLOPE * y)
    else:  # sigmoid: exp + approx reciprocal, both on the EUP slot
        y = pl.reciprocal(1.0 + jnp.exp(-y), approx=True)
    o_ref[...] = y.astype(o_ref.dtype)


def _phase_conv(x, w4, H, W, activation, out_dtype, roll_np):
    # x: (B, Ci, HWp) bf16, w4: (4, 4*Co, Ci) bf16 -> (B, 4*Co, HWp)
    B, Ci, HWp = x.shape
    Co4 = w4.shape[1]
    kern = functools.partial(_phase_conv_kernel, H=H, W=W,
                             activation=activation, roll_np=roll_np)
    return pl.pallas_call(
        kern,
        out_shape=jax.ShapeDtypeStruct((B, Co4, HWp), out_dtype),
        grid_spec=pltpu.PrefetchScalarGridSpec(
            num_scalar_prefetch=0,
            grid=(B,),                                   # images are independent
            in_specs=[
                pl.BlockSpec((None, Ci, HWp), lambda b: (b, 0, 0)),
                pl.BlockSpec((4, Co4, Ci), lambda b: (0, 0, 0)),   # resident weights
            ],
            out_specs=pl.BlockSpec((None, Co4, HWp), lambda b: (b, 0, 0)),
        ),
        compiler_params=pltpu.CompilerParams(
            dimension_semantics=("parallel",)),
    )(x, w4)


def transpose_conv_block(img, w4, activation, out_dtype, roll_np):
    """ConvTranspose2d(k3, s2, p1, op1, bias=False) + activation on (B, Ci, H, W)."""
    B, Ci, H, W = img.shape
    HW = H * W
    HWp = _round_up(HW, 128)
    x = img.reshape(B, Ci, HW)
    if HWp != HW:
        x = jnp.pad(x, ((0, 0), (0, 0), (0, HWp - HW)))
    y = _phase_conv(x, w4, H, W, activation, out_dtype, roll_np)   # (B, 4Co, HWp)
    co = w4.shape[1] // 4
    y = y[:, :, :HW].reshape(B, 2, 2, co, H, W)
    y = y.transpose(0, 3, 4, 1, 5, 2).reshape(B, co, 2 * H, 2 * W)
    # TODO(synk): fold this phase->image interleave into the next layer's kernel
    # (or its out_spec) once a robust lane-strided VMEM scatter is available;
    # today it is one small XLA transpose per layer.
    return y


# ----------------------------------------------------------------------------
# pltpu.roll direction probe (guards against rotate-direction convention
# differences across Mosaic versions).  Run once, eagerly, before jit.
# ----------------------------------------------------------------------------
def _roll_matches_numpy():
    def k(x_ref, o_ref):
        o_ref[...] = pltpu.roll(x_ref[...], 1, axis=1)
    x = lax.broadcasted_iota(jnp.int32, (8, 128), 1)
    y = pl.pallas_call(k, out_shape=jax.ShapeDtypeStruct((8, 128), jnp.int32))(x)
    return int(y[0, 0]) == 127          # np.roll([0..127], 1)[0] == 127


# ----------------------------------------------------------------------------
# Parameter construction (deterministic, synthetic) + one-time layout prep
# ----------------------------------------------------------------------------
def _bn_fold(key, n):
    k1, k2, k3, k4 = jax.random.split(key, 4)
    gamma = 1.0 + 0.1 * jax.random.normal(k1, (n,), jnp.float32)
    beta = 0.1 * jax.random.normal(k2, (n,), jnp.float32)
    mean = 0.1 * jax.random.normal(k3, (n,), jnp.float32)
    var = jax.random.uniform(k4, (n,), jnp.float32, 0.5, 1.5)
    scale = gamma / jnp.sqrt(var + BN_EPS)
    shift = beta - mean * scale
    return scale, shift


def _pack_phase_weight(w_torch):
    """(Ci, Co, 3, 3) PyTorch ConvTranspose2d weight -> (4, 4*Co, Ci).

    Index 0..3 is the tap [x(m,n), x(m,n+1), x(m+1,n), x(m+1,n+1)]; within each
    tap, rows are ordered (output phase p = 2*py + px, co) where the output
    pixel is (2m+py, 2n+px).
    """
    ci, co = w_torch.shape[0], w_torch.shape[1]

    def w(kh, kw):                          # (Co, Ci)
        return w_torch[:, :, kh, kw].T

    z = jnp.zeros((co, ci), w_torch.dtype)
    #                 phase: (0,0)   (0,1)    (1,0)    (1,1)
    tap0 = jnp.concatenate([w(1, 1), w(1, 2), w(2, 1), w(2, 2)], axis=0)
    tap1 = jnp.concatenate([z,       w(1, 0), z,       w(2, 0)], axis=0)
    tap2 = jnp.concatenate([z,       z,       w(0, 1), w(0, 2)], axis=0)
    tap3 = jnp.concatenate([z,       z,       z,       w(0, 0)], axis=0)
    return jnp.stack([tap0, tap1, tap2, tap3], axis=0)


def make_decoder_params(key, channel_size, fc_input_size):
    unflat = fc_input_size // 16                      # four encoder maxpools
    fc_in = channel_size[3] * unflat * unflat
    keys = jax.random.split(key, 8)
    cs = channel_size
    p = {}
    p["w_fc1"] = 0.02 * jax.random.normal(keys[0], (1024, 2048), jnp.float32)
    p["s1"], p["b1"] = _bn_fold(keys[1], 2048)
    p["w_fc2"] = 0.02 * jax.random.normal(keys[2], (2048, fc_in), jnp.float32)
    p["s2"], p["b2"] = _bn_fold(keys[3], fc_in)
    p["w_t0"] = 0.1 * jax.random.normal(keys[4], (cs[3], cs[2], 3, 3), jnp.float32)
    p["w_t1"] = 0.1 * jax.random.normal(keys[5], (cs[2], cs[1], 3, 3), jnp.float32)
    p["w_t2"] = 0.1 * jax.random.normal(keys[6], (cs[1], cs[0], 3, 3), jnp.float32)
    p["w_t3"] = 0.1 * jax.random.normal(keys[7], (cs[0], 1, 3, 3), jnp.float32)
    return p, unflat


def prepare_params(p):
    """One-time layout prep: fold BN scale into FC weight columns (f32) then
    cast to bf16; pack transposed-conv weights into bf16 4-phase matrices."""
    q = {}
    q["w_fc1"] = (p["w_fc1"] * p["s1"][None, :]).astype(jnp.bfloat16)
    q["b1"] = p["b1"]
    q["w_fc2"] = (p["w_fc2"] * p["s2"][None, :]).astype(jnp.bfloat16)
    q["b2"] = p["b2"]
    for k in ("w_t0", "w_t1", "w_t2", "w_t3"):
        q[k] = _pack_phase_weight(p[k]).astype(jnp.bfloat16)
    return q


# ----------------------------------------------------------------------------
# Forward pass
# ----------------------------------------------------------------------------
def decoder_forward(params, x, *, channel_size, unflat, roll_np=True):
    cs = channel_size
    B = x.shape[0]
    h = fc_bn_lrelu(x.astype(jnp.bfloat16), params["w_fc1"], params["b1"])
    h = fc_bn_lrelu(h, params["w_fc2"], params["b2"])
    # torch .view(B, C3, H0, H0): batch stays leading -> plain reshape, no copy.
    img = h.reshape(B, cs[3], unflat, unflat)
    img = transpose_conv_block(img, params["w_t0"], "leaky_relu", jnp.bfloat16, roll_np)
    img = transpose_conv_block(img, params["w_t1"], "leaky_relu", jnp.bfloat16, roll_np)
    img = transpose_conv_block(img, params["w_t2"], "leaky_relu", jnp.bfloat16, roll_np)
    img = transpose_conv_block(img, params["w_t3"], "sigmoid", jnp.float32, roll_np)
    return img                                        # (B, 1, 16*unflat, 16*unflat)


# ----------------------------------------------------------------------------
# Pure-JAX f32 reference (PyTorch semantics) for the in-script self-check
# ----------------------------------------------------------------------------
def _ref_conv_transpose(x_nchw, w_torch):
    # ConvTranspose2d(k3, s2, p1, output_padding=1) == dilate-by-2, pad (1, 2),
    # correlate with the spatially flipped kernel.
    w_f = jnp.transpose(w_torch[:, :, ::-1, ::-1], (1, 0, 2, 3))   # (Co, Ci, 3, 3)
    return lax.conv_general_dilated(
        x_nchw, w_f, window_strides=(1, 1), padding=((1, 2), (1, 2)),
        lhs_dilation=(2, 2), dimension_numbers=("NCHW", "OIHW", "NCHW"),
        precision=lax.Precision.HIGHEST)


def decoder_reference(p, x, channel_size, unflat):
    cs = channel_size

    def fc(h, w, s, b):
        y = jnp.dot(h, w, precision=lax.Precision.HIGHEST)
        y = y * s + b
        return jnp.where(y > 0, y, NEG_SLOPE * y)

    h = fc(x, p["w_fc1"], p["s1"], p["b1"])
    h = fc(h, p["w_fc2"], p["s2"], p["b2"])
    img = h.reshape(x.shape[0], cs[3], unflat, unflat)
    for name, act in (("w_t0", "l"), ("w_t1", "l"), ("w_t2", "l"), ("w_t3", "s")):
        img = _ref_conv_transpose(img, p[name])
        img = (jnp.where(img > 0, img, NEG_SLOPE * img) if act == "l"
               else jax.nn.sigmoid(img))
    return img


# ----------------------------------------------------------------------------
if __name__ == "__main__":
    channel_size = [4, 8, 16, 32]   # small synthetic config
    fc_input_size = 32              # original image size -> unflatten H = W = 2
    batch = 2

    key = jax.random.PRNGKey(0)
    pkey, xkey = jax.random.split(key)
    params, unflat = make_decoder_params(pkey, channel_size, fc_input_size)
    kparams = prepare_params(params)            # one-time layout prep (eager)

    x = jax.random.normal(xkey, (batch, 1024), jnp.float32)

    roll_np = _roll_matches_numpy()             # one-time roll-direction probe

    fwd = jax.jit(functools.partial(decoder_forward, channel_size=channel_size,
                                    unflat=unflat, roll_np=roll_np))
    out = jax.block_until_ready(fwd(kparams, x))

    assert out.shape == (batch, 1, fc_input_size, fc_input_size), out.shape
    assert bool(jnp.all(jnp.isfinite(out)))
    assert bool(jnp.all((out >= 0.0) & (out <= 1.0)))       # sigmoid output

    # Cross-check the bf16 Pallas path against a plain-JAX f32 reference.
    # Tolerance 1e-2 accounts for bf16 activations/weights through 2 FC + 4
    # transposed-conv layers (measured error is ~1e-3 at this config).
    ref = decoder_reference(params, x, channel_size, unflat)
    max_err = float(jnp.max(jnp.abs(out - ref)))
    assert max_err < 1e-2, max_err

    print("KERNEL_OK")
</pallas_src>

<mosaic_0001>
module attributes {stable_mosaic.version = 11 : i64} {
  func.func @k(%arg0: memref<8x128xi32, #tpu.memory_space<vmem>>, %arg1: memref<8x128xi32, #tpu.memory_space<vmem>>) attributes {dimension_semantics = [], scalar_prefetch = 0 : i64, scratch_operands = 0 : i64, tpu.core_type = #tpu.core_type<tc>} {
    %c0 = arith.constant 0 : index
    %c0_0 = arith.constant 0 : index
    %0 = vector.load %arg0[%c0, %c0_0] : memref<8x128xi32, #tpu.memory_space<vmem>>, vector<8x128xi32>
    %c1_i32 = arith.constant 1 : i32
    %1 = tpu.dynamic_rotate %0 by %c1_i32 dim 1 : vector<8x128xi32>, i32 -> vector<8x128xi32>
    %c0_1 = arith.constant 0 : index
    %c0_2 = arith.constant 0 : index
    %2 = vector.load %arg1[%c0_1, %c0_2] : memref<8x128xi32, #tpu.memory_space<vmem>>, vector<8x128xi32>
    tpu.vector_store %arg1[%c0_1, %c0_2], %1 {strides = array<i32>} : memref<8x128xi32, #tpu.memory_space<vmem>>, vector<8x128xi32>,
    return
  }
}

</mosaic_0001>

<bundles_post_ra>
// kernel: tpu_custom_call.1
= control target key start
LH: loop header
LB: loop body
LE: loop exit
PB: predicated region body
PF: predicated region fallthrough
CT: control target
= control target key end

     0   :  { %6 = vsyncpa [#allocation3], 0  ;;  %s106_s0 = inlined_call_operand.hbm [shape: s32[8,128], index: 0, kind: input, shape index: {}]   ;;  %s107_s1 = inlined_call_operand.hbm [shape: s32[8,128], index: 1, kind: output, shape index: {}]  }
   0x1   :  { %7 = vsyncpa [#allocation4], 0  ;;  %s87_s6 = smov [#allocation2]  }
   0x2   :  { %s14_s7 = sshll.u32 %s87_s6, 4  ;;  %s15_s7 = int_to_ptr.vmem [resolvable:$true] %s14_s7 }
   0x3   :  { %s51_s8 = scalar_lea.vmem %s15_s7, 128  ;;  %p56_p1 = scmp.lt.s32.totalorder %s15_s7, %s15_s7 }
   0x4   :  { %p52_p0 = scmp.ne.s32.totalorder %s15_s7, %s51_s8  ;;  %p57_p2 = scmp.lt.s32.totalorder %s51_s8, %s51_s8 }
   0x6   :  { %p58_p3 = por %p57_p2, %p56_p1 }
   0x8   :  { %p59_p4 = pnand %p58_p3, %p52_p0 }
   0xa   :  { %62 = shalt.err (!%p59_p4)
}
   0xb   :  { %17 = dma.hbm_to_vmem [thread:$0]  %s106_s0, 128, %s15_s7, [#allocation3]  }
   0xc   :  { %83 = dma.done.wait [#allocation3], 128  }
   0xd   :  { %84 = vsyncadd [#allocation3], 4294967168  ;;  %v21_v0 = vld [vmem:[#allocation2] sm:$0xff]  ;;  %s88_s11 = smov 1   ;;  %s89_s12 = smov [#allocation5]  }
   0xe   :  { %22 = vrot.lane.b32.xlu0 %v21_v0, %s88_s11  ;;  %s31_s13 = sshll.u32 %s89_s12, 4  ;;  %s32_s13 = int_to_ptr.vmem [resolvable:$true] %s31_s13 }
   0xf   :  { %s63_s14 = scalar_lea.vmem %s32_s13, 128  ;;  %p68_p6 = scmp.lt.s32.totalorder %s32_s13, %s32_s13 }
  0x10   :  { %p64_p5 = scmp.ne.s32.totalorder %s32_s13, %s63_s14  ;;  %p69_p7 = scmp.lt.s32.totalorder %s63_s14, %s63_s14 }
  0x12   :  { %p70_p8 = por %p69_p7, %p68_p6 }
  0x14   :  { %p71_p9 = pnand %p70_p8, %p64_p5 }
  0x80   :  { %v23_v1 = vpop.permute.xlu0 %22 }
  0x81   :  { %24 = vst [vmem:[#allocation5] sm:$0xff] %v23_v1 }
  0x82   :  { %74 = shalt.err (!%p71_p9)
}
  0x83   :  { %34 = dma.vmem_to_hbm [thread:$0]  %s32_s13, 128, %s107_s1, [#allocation4]  }
  0x84   :  { %85 = dma.done.wait [#allocation4], 128  }
  0x85   :  { %86 = vsyncadd [#allocation4], 4294967168 }
  0x86   :  { %38 = vsyncpa [#allocation3], 1 }
  0x87   :  { %39 = vsyncpa [#allocation4], 1 }

</bundles_post_ra>
